<compile_context>
chip_gen: v7x
topology: tpu7x:2x2x1
jax: 0.10.0
libtpu: 0.0.40
codegen_flags: <defaults>
</compile_context>

<pallas_src>
import jax
import jax.numpy as jnp
from jax.experimental import pallas as pl
from jax.experimental.pallas import tpu as pltpu

# Deterministic stand-ins for the script-level `mean` / `ptp` globals used by
# the original module (only element [0] is referenced).
MEAN = (1000.0,)
PTP = (200.0,)

_COL_LO = 133
_COL_HI = 183
_N_COLS = _COL_HI - _COL_LO          # 50
_LANE = 128
_COL_BLOCK = _COL_LO // _LANE        # lane-aligned 128-col block holding the window
assert _COL_HI <= (_COL_BLOCK + 1) * _LANE  # window fits inside one 128-lane block

_TB_MAX = 2048                       # batch-tile rows (1 MiB f32 input tile)


def _make_kernel(sum_shift: float, scale: float, lo: int, hi: int):
    """out[b] = scale * (sum(x[b, lo:hi]) - sum_shift)^2 on a 128-lane slab."""

    def kernel(x_ref, o_ref):
        x = x_ref[...].astype(jnp.float32)                        # (TB, 128)
        # 0/1 weight row selecting the rebased window [lo, hi) inside the slab.
        col = jax.lax.broadcasted_iota(jnp.int32, (1, x.shape[1]), 1)
        w = ((col >= lo) & (col < hi)).astype(jnp.float32)        # (1, 128)
        s = jnp.sum(x * w, axis=1)                                # (TB,)
        e = s - sum_shift
        # Lane-dense store: (TB,) -> (TB // 128, 128) slab of the output.
        o_ref[...] = (e * e * scale).reshape(o_ref.shape).astype(o_ref.dtype)

    return kernel


def conditional_func(x: jax.Array) -> jax.Array:
    """x: [B, L] float32 with L >= 256 (len256 dataset). Returns [B] float32."""
    B, L = x.shape
    assert L >= (_COL_BLOCK + 1) * _LANE, "need L >= 256 for the aligned window"

    shift = (1100.0 - MEAN[0]) / PTP[0]
    sum_shift = float(_N_COLS) * shift            # fold mean(50) into the sum
    scale = 0.001 / (float(_N_COLS) ** 2)

    # Batch tiling: pad B up to a multiple of 128 lanes; cap tile at _TB_MAX rows.
    b_pad = max(_LANE, -(-B // _LANE) * _LANE)
    if b_pad > _TB_MAX:
        tb = _TB_MAX
        b_pad = -(-B // tb) * tb
    else:
        tb = b_pad
    if b_pad != B:
        x = jnp.pad(x, ((0, b_pad - B), (0, 0)))

    n_tiles = b_pad // tb
    rows_per_tile = tb // _LANE                   # output sublane rows per tile
    out_rows = b_pad // _LANE

    lo = _COL_LO - _COL_BLOCK * _LANE             # 5
    hi = _COL_HI - _COL_BLOCK * _LANE             # 55

    out = pl.pallas_call(
        _make_kernel(sum_shift, scale, lo, hi),
        out_shape=jax.ShapeDtypeStruct((out_rows, _LANE), jnp.float32),
        grid=(n_tiles,),
        in_specs=[
            # Only the 128-column slab containing columns [133, 183).
            pl.BlockSpec((tb, _LANE), lambda i: (i, _COL_BLOCK)),
        ],
        out_specs=pl.BlockSpec((rows_per_tile, _LANE), lambda i: (i, 0)),
        compiler_params=pltpu.CompilerParams(
            dimension_semantics=("parallel",),
        ),
    )(x)
    return out.reshape(b_pad)[:B]


def _reference(x: jax.Array) -> jax.Array:
    shift = (1100.0 - MEAN[0]) / PTP[0]
    return (x[:, _COL_LO:_COL_HI].mean(axis=1) - shift) ** 2 * 0.001


if __name__ == "__main__":
    key = jax.random.PRNGKey(0)

    # Small shape consistent with the len256 dataset.
    B, L = 8, 256
    x = jax.random.normal(key, (B, L), dtype=jnp.float32)
    result = jax.block_until_ready(conditional_func(x))
    ref = _reference(x)
    assert result.shape == (B,)
    assert jnp.allclose(result, ref, atol=1e-6, rtol=1e-5)

    # Exercise the batch-padding (tail) path as well.
    B2 = 200
    x2 = jax.random.normal(jax.random.PRNGKey(1), (B2, L), dtype=jnp.float32)
    result2 = jax.block_until_ready(conditional_func(x2))
    assert result2.shape == (B2,)
    assert jnp.allclose(result2, _reference(x2), atol=1e-6, rtol=1e-5)

    print("KERNEL_OK")
</pallas_src>

<mosaic_0001>
module attributes {stable_mosaic.version = 11 : i64} {
  func.func @kernel(%arg0: i32, %arg1: memref<128x128xf32, #tpu.memory_space<vmem>>, %arg2: memref<1x128xf32, #tpu.memory_space<vmem>>) attributes {dimension_semantics = [#tpu.dimension_semantics<parallel>], iteration_bounds = array<i64: 1>, scalar_prefetch = 0 : i64, scratch_operands = 0 : i64, tpu.core_type = #tpu.core_type<tc>, window_params = [{transform_indices = @transform_0, window_bounds = array<i64: 128, 128>}, {transform_indices = @transform_1, window_bounds = array<i64: 1, 128>}]} {
    %c0 = arith.constant 0 : index
    %c0_0 = arith.constant 0 : index
    %0 = vector.load %arg1[%c0, %c0_0] : memref<128x128xf32, #tpu.memory_space<vmem>>, vector<128x128xf32>
    %1 = tpu.iota {dimensions = array<i32: 1>} : vector<1x128xi32>
    %c5_i32 = arith.constant 5 : i32
    %2 = vector.broadcast %c5_i32 : i32 to vector<1x128xi32>
    %3 = arith.cmpi sge, %1, %2 : vector<1x128xi32>
    %c55_i32 = arith.constant 55 : i32
    %4 = vector.broadcast %c55_i32 : i32 to vector<1x128xi32>
    %5 = arith.cmpi slt, %1, %4 : vector<1x128xi32>
    %6 = arith.andi %3, %5 : vector<1x128xi1>
    %7 = arith.extui %6 : vector<1x128xi1> to vector<1x128xi32>
    %8 = arith.sitofp %7 : vector<1x128xi32> to vector<1x128xf32>
    %9 = vector.broadcast %8 : vector<1x128xf32> to vector<128x128xf32>
    %10 = arith.mulf %0, %9 : vector<128x128xf32>
    %cst = arith.constant dense<0.000000e+00> : vector<128xf32>
    %11 = vector.multi_reduction <add>, %10, %cst [1] : vector<128x128xf32> to vector<128xf32>
    %cst_1 = arith.constant 2.500000e+01 : f32
    %12 = vector.broadcast %cst_1 : f32 to vector<128xf32>
    %13 = arith.subf %11, %12 : vector<128xf32>
    %14 = arith.mulf %13, %13 : vector<128xf32>
    %cst_2 = arith.constant 4.000000e-07 : f32
    %15 = vector.broadcast %cst_2 : f32 to vector<128xf32>
    %16 = arith.mulf %14, %15 : vector<128xf32>
    %17 = vector.shape_cast %16 : vector<128xf32> to vector<1x128xf32>
    %c0_3 = arith.constant 0 : index
    %c0_4 = arith.constant 0 : index
    %18 = vector.load %arg2[%c0_3, %c0_4] : memref<1x128xf32, #tpu.memory_space<vmem>>, vector<1x128xf32>
    tpu.vector_store %arg2[%c0_3, %c0_4], %17 {strides = array<i32>} : memref<1x128xf32, #tpu.memory_space<vmem>>, vector<1x128xf32>,
    return
  }
  func.func @transform_0(%arg0: i32) -> (i32, i32) {
    %c1_i32 = arith.constant 1 : i32
    %c0_i32 = arith.constant 0 : i32
    return %arg0, %c1_i32 : i32, i32
  }
  func.func @transform_1(%arg0: i32) -> (i32, i32) {
    %c0_i32 = arith.constant 0 : i32
    %c0_i32_0 = arith.constant 0 : i32
    return %arg0, %c0_i32 : i32, i32
  }
}

</mosaic_0001>

<bundles_post_ra>
// kernel: tpu_custom_call.1
= control target key start
LH: loop header
LB: loop body
LE: loop exit
PB: predicated region body
PF: predicated region fallthrough
CT: control target
= control target key end

     0   :  { %6 = vsyncpa [#allocation3], 0  ;;  %s518_s0 = inlined_call_operand.hbm [shape: f32[128,256], index: 0, kind: input, shape index: {}]   ;;  %s519_s1 = inlined_call_operand.hbm [shape: f32[1,128], index: 1, kind: output, shape index: {}]  }
   0x1   :  { %7 = vsyncpa [#allocation4], 0  ;;  %s13_s8 = scalar_lea.hbm %s518_s0, 128  ;;  %s359_s9 = smov [#allocation2]  }
   0x2   :  { %s14_s10 = sshll.u32 %s359_s9, 4  ;;  %s332_s13 = scalar_lea.hbm %s518_s0, 2176  ;;  %s15_s10 = int_to_ptr.vmem [resolvable:$true] %s14_s10 }
   0x3   :  { %p309_p0 = scmp.ne.s32.totalorder %s13_s8, %s332_s13  ;;  %s310_s16 = scalar_lea.hbm %s518_s0, 4096 }
   0x4   :  { %p311_p1 = scmp.lt.u32.totalorder %s13_s8, %s518_s0  ;;  %p312_p2 = scmp.lt.u32.totalorder %s310_s16, %s332_s13 }
   0x5   :  { %p314_p4 = scmp.lt.u32.totalorder %s332_s13, %s13_s8 }
   0x6   :  { %p313_p3 = por %p312_p2, %p311_p1 }
   0x8   :  { %p315_p5 = por %p314_p4, %p313_p3 }
   0xa   :  { %p316_p6 = pnand %p315_p5, %p309_p0 }
   0xc   :  { %319 = shalt.err (!%p316_p6)
}
   0xd   :  { %s320_s19 = scalar_lea.vmem %s15_s10, 2048  ;;  %p325_p8 = scmp.lt.s32.totalorder %s15_s10, %s15_s10 }
   0xe   :  { %p321_p7 = scmp.ne.s32.totalorder %s15_s10, %s320_s19  ;;  %p326_p9 = scmp.lt.s32.totalorder %s320_s19, %s320_s19 }
  0x10   :  { %p327_p10 = por %p326_p9, %p325_p8 }
  0x12   :  { %p328_p11 = pnand %p327_p10, %p321_p7 }
  0x14   :  { %331 = shalt.err (!%p328_p11)
}
  0x15   :  { %s360_s20 = smov 256   ;;  %s361_s21 = smov 128  }
  0x16   :  { %s362_s22 = smov 8  }
  0x17   :  { %20 = dma.hbm_to_vmem [thread:$0]  %s13_s8, 2048, %s15_s10, [#allocation3], %s360_s20, %s361_s21, %s362_s22  }
  0x18   :  { %355 = dma.done.wait [#allocation3], 2048  }
  0x19   :  { %356 = vsyncadd [#allocation3], 4294965248  ;;  %v40_v0 = vlaneseq  ;;  %v363_v4 = vmov 0.0   ;;  %v24_v6 = vld [vmem:[#allocation2] sm:$0xff]  ;;  %v26_v7 = vld [vmem:[#allocation2 + $0x10] sm:$0xff]  ;;  %vm168_vm3 = vcmask 130112  }
  0x1a   :  { %v25_v8 = vld [vmem:[#allocation2 + $0x8] sm:$0xff]  ;;  %v27_v11 = vld [vmem:[#allocation2 + $0x18] sm:$0xff]  ;;  %v28_v14 = vld [vmem:[#allocation2 + $0x20] sm:$0xff]  ;;  %vm175_vm4 = vcmask 195712   ;;  %vm182_vm5 = vcmask 261312   ;;  %vm189_vm6 = vcmask 326912  }
  0x1b   :  { %v387_v1 = vand.u32 127, %v40_v0  ;;  %v389_v2 = vshrl.u32 %v40_v0, 7  ;;  %v29_v15 = vld [vmem:[#allocation2 + $0x28] sm:$0xff]  ;;  %v30_v18 = vld [vmem:[#allocation2 + $0x30] sm:$0xff]  ;;  %v31_v19 = vld [vmem:[#allocation2 + $0x38] sm:$0xff]  ;;  %vm196_vm7 = vcmask 392512  }
  0x1c   :  { %v32_v22 = vld [vmem:[#allocation2 + $0x40] sm:$0xff]  ;;  %v33_v23 = vld [vmem:[#allocation2 + $0x48] sm:$0xff]  ;;  %v34_v26 = vld [vmem:[#allocation2 + $0x50] sm:$0xff]  ;;  %vm203_vm8 = vcmask 458112   ;;  %vm210_vm9 = vcmask 523712   ;;  %vm217_vm10 = vcmask 589312  }
  0x1d   :  { %vm42_vm0 = vcmp.ge.s32.totalorder %v387_v1, 5  ;;  %vm43_vm1 = vcmp.lt.s32.totalorder %v387_v1, 55  ;;  %v161_v3 = vsub.s32 %v387_v1, %v389_v2  ;;  %v35_v27 = vld [vmem:[#allocation2 + $0x58] sm:$0xff]  ;;  %v36_v30 = vld [vmem:[#allocation2 + $0x60] sm:$0xff]  ;;  %v37_v31 = vld [vmem:[#allocation2 + $0x68] sm:$0xff]  ;;  %v396_v32 = vadd.s32 4294967280, %v387_v1 }
  0x1e   :  { %vm44_vm2 = vmand %vm42_vm0, %vm43_vm1  ;;  %v163_v36 = vadd.s32 4294967288, %v387_v1  ;;  %v38_v37 = vld [vmem:[#allocation2 + $0x70] sm:$0xff]  ;;  %v39_v38 = vld [vmem:[#allocation2 + $0x78] sm:$0xff]  ;;  %v177_v39 = vadd.s32 4294967272, %v387_v1  ;;  %v405_v44 = vadd.s32 4294967264, %v387_v1  ;;  %v408_v45 = vadd.s32 4294967256, %v387_v1 }
  0x1f   :  { %v285_v5 = vsel %vm44_vm2, 1.0, %v363_v4  ;;  %v173_v33 = vsub.s32 %v396_v32, %v389_v2  ;;  %v415_v48 = vadd.s32 4294967248, %v387_v1  ;;  %v418_v49 = vadd.s32 4294967240, %v387_v1  ;;  %s364_s0 = smov [#allocation5]  }
  0x20   :  { %v47_v9 = vmul.f32 %v285_v5, %v24_v6  ;;  %v49_v10 = vmul.f32 %v285_v5, %v26_v7  ;;  %v48_v12 = vmul.f32 %v285_v5, %v25_v8  ;;  %v50_v13 = vmul.f32 %v285_v5, %v27_v11  ;;  %s276_s23 = sshll.u32 %s364_s0, 4  ;;  %s277_s23 = int_to_ptr.vmem [resolvable:$true] %s276_s23 }
  0x21   :  { %v51_v16 = vmul.f32 %v285_v5, %v28_v14  ;;  %v52_v17 = vmul.f32 %v285_v5, %v29_v15  ;;  %v53_v20 = vmul.f32 %v285_v5, %v30_v18  ;;  %v54_v21 = vmul.f32 %v285_v5, %v31_v19  ;;  %s333_s24 = scalar_lea.vmem %s277_s23, 16  ;;  %s337_s25 = scalar_lea.vmem %s277_s23, 32 }
  0x22   :  { %63 = vadd.xlane.f32.xlu0 %v47_v9  ;;  %67 = vadd.xlane.f32.xlu1 %v49_v10  ;;  %v55_v24 = vmul.f32 %v285_v5, %v32_v22  ;;  %v56_v25 = vmul.f32 %v285_v5, %v33_v23  ;;  %v57_v28 = vmul.f32 %v285_v5, %v34_v26  ;;  %v425_v52 = vadd.s32 4294967232, %v387_v1  ;;  %p334_p12 = scmp.ne.s32.totalorder %s277_s23, %s333_s24  ;;  %p338_p13 = scmp.lt.s32.totalorder %s277_s23, %s277_s23 }
  0x23   :  { %v58_v29 = vmul.f32 %v285_v5, %v35_v27  ;;  %v59_v34 = vmul.f32 %v285_v5, %v36_v30  ;;  %v60_v35 = vmul.f32 %v285_v5, %v37_v31  ;;  %v166_v40 = vsub.s32 %v163_v36, %v389_v2  ;;  %p339_p0 = scmp.lt.s32.totalorder %s337_s25, %s333_s24 }
  0x24   :  { %v180_v41 = vsub.s32 %v177_v39, %v389_v2  ;;  %v61_v42 = vmul.f32 %v285_v5, %v38_v37  ;;  %v62_v43 = vmul.f32 %v285_v5, %v39_v38  ;;  %v187_v46 = vsub.s32 %v405_v44, %v389_v2 }
  0x25   :  { %v194_v47 = vsub.s32 %v408_v45, %v389_v2  ;;  %v201_v50 = vsub.s32 %v415_v48, %v389_v2  ;;  %v208_v51 = vsub.s32 %v418_v49, %v389_v2  ;;  %v428_v53 = vadd.s32 4294967224, %v387_v1  ;;  %p340_p1 = por %p339_p0, %p338_p13 }
  0x26   :  { %65 = vadd.xlane.f32.xlu0 %v48_v12  ;;  %69 = vadd.xlane.f32.xlu1 %v50_v13  ;;  %v215_v54 = vsub.s32 %v425_v52, %v389_v2  ;;  %v435_v56 = vadd.s32 4294967216, %v387_v1  ;;  %v438_v57 = vadd.s32 4294967208, %v387_v1  ;;  %v445_v60 = vadd.s32 4294967200, %v387_v1 }
  0x27   :  { %v222_v55 = vsub.s32 %v428_v53, %v389_v2  ;;  %v448_v61 = vadd.s32 4294967192, %v387_v1  ;;  %v455_v0 = vadd.s32 4294967184, %v387_v1  ;;  %v458_v4 = vadd.s32 4294967176, %v387_v1  ;;  %p341_p2 = pnand %p340_p1, %p334_p12 }
  0x28   :  { %v229_v58 = vsub.s32 %v435_v56, %v389_v2  ;;  %v236_v59 = vsub.s32 %v438_v57, %v389_v2  ;;  %v243_v62 = vsub.s32 %v445_v60, %v389_v2  ;;  %vm224_vm11 = vcmask 654912  }
  0x29   :  { %v250_v63 = vsub.s32 %v448_v61, %v389_v2  ;;  %v257_v5 = vsub.s32 %v455_v0, %v389_v2  ;;  %v264_v6 = vsub.s32 %v458_v4, %v389_v2  ;;  %vm231_vm12 = vcmask 720512  }
  0x2a   :  { %71 = vadd.xlane.f32.xlu0 %v51_v16  ;;  %73 = vadd.xlane.f32.xlu1 %v52_v17  ;;  %vm238_vm13 = vcmask 786112   ;;  %vm245_vm14 = vcmask 851712   ;;  %vm252_vm15 = vcmask 917312   ;;  %vm259_vm0 = vcmask 982912  }
  0x2b   :  { %vm266_vm1 = vcmask 1048512  }
  0x2e   :  { %75 = vadd.xlane.f32.xlu0 %v53_v20  ;;  %77 = vadd.xlane.f32.xlu1 %v54_v21 }
  0x32   :  { %79 = vadd.xlane.f32.xlu0 %v55_v24  ;;  %81 = vadd.xlane.f32.xlu1 %v56_v25 }
  0x36   :  { %83 = vadd.xlane.f32.xlu0 %v57_v28  ;;  %85 = vadd.xlane.f32.xlu1 %v58_v29 }
  0x3a   :  { %87 = vadd.xlane.f32.xlu0 %v59_v34  ;;  %89 = vadd.xlane.f32.xlu1 %v60_v35 }
  0x3e   :  { %91 = vadd.xlane.f32.xlu0 %v61_v42  ;;  %93 = vadd.xlane.f32.xlu1 %v62_v43 }
  0xaf   :  { %v64_v7 = vpop.xlane.xlu0 %63  ;;  %v68_v8 = vpop.xlane.xlu1 %67 }
  0xb0   :  { %v286_v9 = vadd.f32 -25.0, %v64_v7  ;;  %v288_v10 = vadd.f32 -25.0, %v68_v8 }
  0xb2   :  { %v111_v11 = vmul.f32 %v286_v9, %v286_v9  ;;  %v113_v12 = vmul.f32 %v288_v10, %v288_v10 }
  0xb3   :  { %v66_v13 = vpop.xlane.xlu0 %65  ;;  %v70_v14 = vpop.xlane.xlu1 %69 }
  0xb4   :  { %v287_v15 = vadd.f32 -25.0, %v66_v13  ;;  %v289_v16 = vadd.f32 -25.0, %v70_v14  ;;  %v127_v17 = vmul.f32 4e-07, %v111_v11  ;;  %v129_v20 = vmul.f32 4e-07, %v113_v12 }
  0xb6   :  { %v112_v18 = vmul.f32 %v287_v15, %v287_v15  ;;  %v114_v19 = vmul.f32 %v289_v16, %v289_v16  ;;  %v162_v27 = vrot.slane %v127_v17, %v161_v3  ;;  %v174_v34 = vrot.slane %v129_v20, %v173_v33 }
  0xb7   :  { %v72_v21 = vpop.xlane.xlu0 %71  ;;  %v74_v22 = vpop.xlane.xlu1 %73 }
  0xb8   :  { %v128_v23 = vmul.f32 4e-07, %v112_v18  ;;  %v130_v24 = vmul.f32 4e-07, %v114_v19  ;;  %v290_v25 = vadd.f32 -25.0, %v72_v21  ;;  %v291_v26 = vadd.f32 -25.0, %v74_v22 }
  0xba   :  { %v167_v28 = vrot.slane %v128_v23, %v166_v40  ;;  %v181_v29 = vrot.slane %v130_v24, %v180_v41  ;;  %v115_v30 = vmul.f32 %v290_v25, %v290_v25  ;;  %v116_v31 = vmul.f32 %v291_v26, %v291_v26 }
  0xbb   :  { %v76_v35 = vpop.xlane.xlu0 %75  ;;  %v78_v36 = vpop.xlane.xlu1 %77 }
  0xbc   :  { %v169_v37 = vsel %vm168_vm3, %v167_v28, %v162_v27  ;;  %v131_v38 = vmul.f32 4e-07, %v115_v30  ;;  %v132_v39 = vmul.f32 4e-07, %v116_v31  ;;  %v292_v42 = vadd.f32 -25.0, %v76_v35 }
  0xbd   :  { %v176_v43 = vsel %vm175_vm4, %v174_v34, %v169_v37  ;;  %v293_v1 = vadd.f32 -25.0, %v78_v36 }
  0xbe   :  { %v183_v3 = vsel %vm182_vm5, %v181_v29, %v176_v43  ;;  %v188_v40 = vrot.slane %v131_v38, %v187_v46  ;;  %v195_v32 = vrot.slane %v132_v39, %v194_v47  ;;  %v117_v33 = vmul.f32 %v292_v42, %v292_v42 }
  0xbf   :  { %v118_v41 = vmul.f32 %v293_v1, %v293_v1  ;;  %v80_v7 = vpop.xlane.xlu0 %79  ;;  %v82_v8 = vpop.xlane.xlu1 %81 }
  0xc0   :  { %v190_v9 = vsel %vm189_vm6, %v188_v40, %v183_v3  ;;  %v133_v10 = vmul.f32 4e-07, %v117_v33  ;;  %v294_v11 = vadd.f32 -25.0, %v80_v7  ;;  %v295_v12 = vadd.f32 -25.0, %v82_v8 }
  0xc1   :  { %v197_v13 = vsel %vm196_vm7, %v195_v32, %v190_v9  ;;  %v134_v14 = vmul.f32 4e-07, %v118_v41 }
  0xc2   :  { %v202_v44 = vrot.slane %v133_v10, %v201_v50  ;;  %v119_v46 = vmul.f32 %v294_v11, %v294_v11  ;;  %v120_v15 = vmul.f32 %v295_v12, %v295_v12 }
  0xc3   :  { %v209_v45 = vrot.slane %v134_v14, %v208_v51  ;;  %v84_v47 = vpop.xlane.xlu0 %83  ;;  %v86_v16 = vpop.xlane.xlu1 %85 }
  0xc4   :  { %v204_v17 = vsel %vm203_vm8, %v202_v44, %v197_v13  ;;  %v135_v18 = vmul.f32 4e-07, %v119_v46  ;;  %v136_v19 = vmul.f32 4e-07, %v120_v15  ;;  %v296_v20 = vadd.f32 -25.0, %v84_v47 }
  0xc5   :  { %v211_v21 = vsel %vm210_vm9, %v209_v45, %v204_v17  ;;  %v297_v22 = vadd.f32 -25.0, %v86_v16 }
  0xc6   :  { %v216_v48 = vrot.slane %v135_v18, %v215_v54  ;;  %v223_v50 = vrot.slane %v136_v19, %v222_v55  ;;  %v121_v49 = vmul.f32 %v296_v20, %v296_v20 }
  0xc7   :  { %v122_v51 = vmul.f32 %v297_v22, %v297_v22  ;;  %v88_v23 = vpop.xlane.xlu0 %87  ;;  %v90_v24 = vpop.xlane.xlu1 %89 }
  0xc8   :  { %v218_v25 = vsel %vm217_vm10, %v216_v48, %v211_v21  ;;  %v137_v26 = vmul.f32 4e-07, %v121_v49  ;;  %v298_v27 = vadd.f32 -25.0, %v88_v23  ;;  %v299_v28 = vadd.f32 -25.0, %v90_v24 }
  0xc9   :  { %v225_v29 = vsel %vm224_vm11, %v223_v50, %v218_v25  ;;  %v138_v30 = vmul.f32 4e-07, %v122_v51 }
  0xca   :  { %v230_v52 = vrot.slane %v137_v26, %v229_v58  ;;  %v123_v54 = vmul.f32 %v298_v27, %v298_v27  ;;  %v124_v31 = vmul.f32 %v299_v28, %v299_v28 }
  0xcb   :  { %v237_v53 = vrot.slane %v138_v30, %v236_v59  ;;  %v92_v55 = vpop.xlane.xlu0 %91  ;;  %v94_v34 = vpop.xlane.xlu1 %93 }
  0xcc   :  { %v232_v35 = vsel %vm231_vm12, %v230_v52, %v225_v29  ;;  %v139_v36 = vmul.f32 4e-07, %v123_v54  ;;  %v140_v37 = vmul.f32 4e-07, %v124_v31  ;;  %v300_v38 = vadd.f32 -25.0, %v92_v55 }
  0xcd   :  { %v239_v39 = vsel %vm238_vm13, %v237_v53, %v232_v35  ;;  %v301_v42 = vadd.f32 -25.0, %v94_v34 }
  0xce   :  { %v244_v56 = vrot.slane %v139_v36, %v243_v62  ;;  %v251_v58 = vrot.slane %v140_v37, %v250_v63  ;;  %v125_v43 = vmul.f32 %v300_v38, %v300_v38 }
  0xcf   :  { %v126_v57 = vmul.f32 %v301_v42, %v301_v42 }
  0xd0   :  { %v246_v59 = vsel %vm245_vm14, %v244_v56, %v239_v39  ;;  %v141_v1 = vmul.f32 4e-07, %v125_v43 }
  0xd1   :  { %v142_v3 = vmul.f32 4e-07, %v126_v57  ;;  %v253_v40 = vsel %vm252_vm15, %v251_v58, %v246_v59 }
  0xd2   :  { %v258_v32 = vrot.slane %v141_v1, %v257_v5 }
  0xd3   :  { %v265_v60 = vrot.slane %v142_v3, %v264_v6 }
  0xd4   :  { %v260_v61 = vsel %vm259_vm0, %v258_v32, %v253_v40 }
  0xd5   :  { %v267_v62 = vsel %vm266_vm1, %v265_v60, %v260_v61 }
  0xd6   :  { %269 = vst [vmem:[#allocation5] sm:$0x1] %v267_v62 }
  0xd7   :  { %344 = shalt.err (!%p341_p2)
}
  0xd8   :  { %s345_s28 = scalar_lea.hbm %s519_s1, 16 }
  0xd9   :  { %p346_p3 = scmp.ne.s32.totalorder %s519_s1, %s345_s28  ;;  %p349_p4 = scmp.lt.u32.totalorder %s345_s28, %s519_s1 }
  0xdb   :  { %p351_p5 = pnand %p349_p4, %p346_p3 }
  0xdd   :  { %354 = shalt.err (!%p351_p5)
}
  0xde   :  { %279 = dma.vmem_to_hbm [thread:$0]  %s277_s23, 16, %s519_s1, [#allocation4]  }
  0xdf   :  { %357 = dma.done.wait [#allocation4], 16  }
  0xe0   :  { %358 = vsyncadd [#allocation4], 4294967280 }
  0xe1   :  { %283 = vsyncpa [#allocation3], 1 }
  0xe2   :  { %284 = vsyncpa [#allocation4], 1 }

</bundles_post_ra>
